<compile_context>
chip_gen: v5e
topology: v5e:2x2
jax: 0.10.0
libtpu: 0.0.40
codegen_flags: <defaults>
</compile_context>

<pallas_src>
import functools
import math
import random

import jax
import jax.numpy as jnp
from jax.experimental import pallas as pl
from jax.experimental.pallas import tpu as pltpu


def _build_offsets(radius):
    offsets = []
    for dy in range(-radius, radius + 1):
        for dx in range(-radius, radius + 1):
            if (dx, dy) == (0, 0):
                continue
            if abs(dx) <= 1 and abs(dy) <= 1:
                continue
            offsets.append((dy, dx))
    return offsets


def _single_tensorcore_chip():
    """True for chips with one TensorCore (v5e / v6e); False for v7x (2 TCs)."""
    try:
        kind = jax.devices()[0].device_kind.lower()
    except Exception:
        return False
    return any(tag in kind for tag in ("v5 lite", "v5e", "v6 lite", "v6e"))


def _graph_aug_kernel(x_ref, wm_ref, bm_ref, w1x_ref, w1a_ref, b1_ref,
                      w2_ref, b2_ref, out_ref,
                      *, offsets, C, H, W, batch_in_block):
    HW = H * W
    n_off = len(offsets)
    inv_n = 1.0 / n_off   # uniform softmax weight (exact: roll preserves the mean)

    # Per-lane column index and per-dx wrap masks: built ONCE, reused by every
    # roll2d call and every batch element (offsets are compile-time constants).
    col = jax.lax.broadcasted_iota(jnp.int32, (1, HW), 1) % W
    wrap_masks = {}
    for dy, dx in offsets:
        dxm = dx % W
        if dxm != 0 and dxm not in wrap_masks:
            wrap_masks[dxm] = col >= dxm

    # Weights are tiny; load once per kernel invocation.
    wm, bm = wm_ref[...], bm_ref[...]
    w1x, w1a, b1 = w1x_ref[...], w1a_ref[...], b1_ref[...]
    w2, b2 = w2_ref[...], b2_ref[...]

    def roll2d(v, dy, dx):
        # Circular (dy, dx) roll of the row-major-flattened (H, W) spatial dims on
        # the lane axis of a (rows, HW) array: one XLU rotate by dy*W+dx, plus a
        # second rotate + per-lane select fixing the dx row-wraparound lanes.
        dym, dxm = dy % H, dx % W
        shift = (dym * W + dxm) % HW
        a = pltpu.roll(v, shift, axis=1) if shift else v
        if dxm == 0:
            return a
        b = pltpu.roll(v, (shift - W) % HW, axis=1)
        return jnp.where(wrap_masks[dxm], a, b)

    for bi in range(batch_in_block):            # static loop (1 when grid=(B,))
        xf = x_ref[bi]                           # (C, HW), lane-dense

        # Message projection (1x1 conv) on the MXU.
        m = jnp.dot(wm, xf, preferred_element_type=jnp.float32) + bm   # (C, HW)

        # Uniform-weight aggregation: unweighted sum of rolled messages in two
        # independent accumulators, scaled by 1/N once at the end.
        acc_even = jnp.zeros((C, HW), dtype=jnp.float32)
        acc_odd = jnp.zeros((C, HW), dtype=jnp.float32)
        for i, (dy, dx) in enumerate(offsets):   # static compile-time unroll
            rm = roll2d(m, dy, dx)
            if i % 2 == 0:
                acc_even = acc_even + rm
            else:
                acc_odd = acc_odd + rm
        agg = inv_n * (acc_even + acc_odd)

        # Channel-wise gate MLP; concat([x, agg]) folded into split weights.
        h1 = jnp.maximum(
            jnp.dot(w1x, xf, preferred_element_type=jnp.float32)
            + jnp.dot(w1a, agg, preferred_element_type=jnp.float32)
            + b1, 0.0)
        gate = jax.nn.sigmoid(
            jnp.dot(w2, h1, preferred_element_type=jnp.float32) + b2)

        out_ref[bi] = agg * gate                 # lane-dense (C, HW) store


def graph_augmentation(x, params, offsets, *, collapse_batch=None):
    B, C, H, W = x.shape
    HW = H * W
    gh = params["w1"].shape[0]

    # Lane-dense layout: spatial dims flattened so HW (multiple of 128) is lanes.
    x_flat = x.reshape(B, C, HW)

    # Split the first gate conv so concat([x, agg]) is never materialized.
    w1x = params["w1"][:, :C]
    w1a = params["w1"][:, C:]

    if collapse_batch is None:
        # Single-TC chips (v5e/v6e): fold the tiny batch grid into one step.
        # Dual-TC chips (v7x): keep grid=(B,) parallel so both cores get work.
        collapse_batch = _single_tensorcore_chip() or B == 1

    if collapse_batch:
        grid = (1,)
        batch_in_block = B
        x_spec = pl.BlockSpec((B, C, HW), lambda b: (0, 0, 0))
        out_spec = pl.BlockSpec((B, C, HW), lambda b: (0, 0, 0))
    else:
        grid = (B,)
        batch_in_block = 1
        x_spec = pl.BlockSpec((1, C, HW), lambda b: (b, 0, 0))
        out_spec = pl.BlockSpec((1, C, HW), lambda b: (b, 0, 0))

    kernel = functools.partial(
        _graph_aug_kernel, offsets=tuple(offsets), C=C, H=H, W=W,
        batch_in_block=batch_in_block)

    def full(shape):
        # Whole-array block, constant index map (never re-fetched across grid).
        n = len(shape)
        return pl.BlockSpec(shape, lambda b, _n=n: (0,) * _n)

    in_specs = [
        x_spec,                                  # x (lane-dense)
        full((C, C)), full((C, 1)),              # message projection
        full((gh, C)), full((gh, C)), full((gh, 1)),  # gate conv 1 (split)
        full((C, gh)), full((C, 1)),             # gate conv 2
    ]

    out_flat = pl.pallas_call(
        kernel,
        out_shape=jax.ShapeDtypeStruct((B, C, HW), x.dtype),
        grid=grid,
        in_specs=in_specs,
        out_specs=out_spec,
        compiler_params=pltpu.CompilerParams(
            dimension_semantics=("parallel",)),
    )(x_flat, params["wm"], params["bm"], w1x, w1a, params["b1"],
      params["w2"], params["b2"])

    return out_flat.reshape(B, C, H, W)


def reference(x, params, offsets):
    """Pure-JAX replica of the PyTorch forward (for verification)."""
    def conv1x1(w, b, t):
        return jnp.einsum("oc,bchw->bohw", w, t) + b.reshape(1, -1, 1, 1)

    Q = conv1x1(params["wq"], params["bq"], x)
    K = conv1x1(params["wk"], params["bk"], x)
    M = conv1x1(params["wm"], params["bm"], x)
    scaling = params["scaling"][0]

    Q_pooled = Q.mean(axis=(2, 3))                       # (B, d)
    msgs, affs = [], []
    for dy, dx in offsets:
        sK = jnp.roll(K, shift=(dy, dx), axis=(2, 3))
        sM = jnp.roll(M, shift=(dy, dx), axis=(2, 3))
        sK_pooled = sK.mean(axis=(2, 3))
        attn = (Q_pooled * sK_pooled).sum(axis=1) / (scaling + 1e-06)   # (B,)
        affs.append(attn)
        msgs.append(sM)
    messages = jnp.stack(msgs, axis=0)                   # (N, B, C, H, W)
    affinities = jnp.stack(affs, axis=0)                 # (N, B)
    w = jax.nn.softmax(affinities, axis=0)[:, :, None, None, None]
    agg = (messages * w).sum(axis=0)                     # (B, C, H, W)

    concat = jnp.concatenate([x, agg], axis=1)
    h = jax.nn.relu(conv1x1(params["w1"], params["b1"], concat))
    gate = jax.nn.sigmoid(conv1x1(params["w2"], params["b2"], h))
    return agg * gate


if __name__ == "__main__":
    B, C, H, W = 2, 4, 16, 16
    d_model, attention_radius, num_neighbors, gating_hidden = 16, 4, 8, 32

    # Deterministic neighbor choice (the PyTorch module resamples with Python's
    # global `random` each forward — here the sample is fixed with seed 0).
    # TODO(synk): per-step stochastic neighbor resampling is not reproduced.
    all_offsets = _build_offsets(attention_radius)
    offsets = random.Random(0).sample(all_offsets,
                                      min(num_neighbors, len(all_offsets)))

    key = jax.random.PRNGKey(0)
    ks = jax.random.split(key, 11)
    params = {
        # wq/wk/bq/bk/scaling only feed the (provably uniform) softmax; they are
        # kept for the reference check but unused by the kernel.
        "wq": 0.1 * jax.random.normal(ks[0], (d_model, C), jnp.float32),
        "bq": 0.1 * jax.random.normal(ks[1], (d_model, 1), jnp.float32),
        "wk": 0.1 * jax.random.normal(ks[2], (d_model, C), jnp.float32),
        "bk": 0.1 * jax.random.normal(ks[3], (d_model, 1), jnp.float32),
        "wm": 0.1 * jax.random.normal(ks[4], (C, C), jnp.float32),
        "bm": 0.1 * jax.random.normal(ks[5], (C, 1), jnp.float32),
        "w1": 0.1 * jax.random.normal(ks[6], (gating_hidden, 2 * C), jnp.float32),
        "b1": 0.1 * jax.random.normal(ks[7], (gating_hidden, 1), jnp.float32),
        "w2": 0.1 * jax.random.normal(ks[8], (C, gating_hidden), jnp.float32),
        "b2": 0.1 * jax.random.normal(ks[9], (C, 1), jnp.float32),
        "scaling": jnp.array([math.sqrt(d_model)], dtype=jnp.float32),
    }
    x = jax.random.normal(ks[10], (B, C, H, W), dtype=jnp.float32)

    out = graph_augmentation(x, params, offsets)
    out = jax.block_until_ready(out)

    ref = reference(x, params, offsets)
    assert out.shape == (B, C, H, W)
    assert jnp.allclose(out, ref, rtol=1e-4, atol=1e-5), \
        float(jnp.max(jnp.abs(out - ref)))

    print("KERNEL_OK")
</pallas_src>

<mosaic_0001>
module attributes {stable_mosaic.version = 11 : i64} {
  func.func @_graph_aug_kernel(%arg0: i32, %arg1: memref<1x4x256xf32, #tpu.memory_space<vmem>>, %arg2: memref<4x4xf32, #tpu.memory_space<vmem>>, %arg3: memref<4x1xf32, #tpu.memory_space<vmem>>, %arg4: memref<32x4xf32, #tpu.memory_space<vmem>>, %arg5: memref<32x4xf32, #tpu.memory_space<vmem>>, %arg6: memref<32x1xf32, #tpu.memory_space<vmem>>, %arg7: memref<4x32xf32, #tpu.memory_space<vmem>>, %arg8: memref<4x1xf32, #tpu.memory_space<vmem>>, %arg9: memref<1x4x256xf32, #tpu.memory_space<vmem>>) attributes {dimension_semantics = [#tpu.dimension_semantics<parallel>], iteration_bounds = array<i64: 2>, scalar_prefetch = 0 : i64, scratch_operands = 0 : i64, tpu.core_type = #tpu.core_type<tc>, window_params = [{transform_indices = @transform_0, window_bounds = array<i64: 1, 4, 256>}, {pipeline_mode = #tpu.pipeline_mode<synchronous>, transform_indices = @transform_1, window_bounds = array<i64: 4, 4>}, {pipeline_mode = #tpu.pipeline_mode<synchronous>, transform_indices = @transform_2, window_bounds = array<i64: 4, 1>}, {pipeline_mode = #tpu.pipeline_mode<synchronous>, transform_indices = @transform_3, window_bounds = array<i64: 32, 4>}, {pipeline_mode = #tpu.pipeline_mode<synchronous>, transform_indices = @transform_4, window_bounds = array<i64: 32, 4>}, {pipeline_mode = #tpu.pipeline_mode<synchronous>, transform_indices = @transform_5, window_bounds = array<i64: 32, 1>}, {pipeline_mode = #tpu.pipeline_mode<synchronous>, transform_indices = @transform_6, window_bounds = array<i64: 4, 32>}, {pipeline_mode = #tpu.pipeline_mode<synchronous>, transform_indices = @transform_7, window_bounds = array<i64: 4, 1>}, {transform_indices = @transform_8, window_bounds = array<i64: 1, 4, 256>}]} {
    %0 = tpu.iota {dimensions = array<i32: 1>} : vector<1x256xi32>
    %c16_i32 = arith.constant 16 : i32
    %c0_i32 = arith.constant 0 : i32
    %1 = arith.cmpi eq, %c16_i32, %c0_i32 : i32
    %c1_i32 = arith.constant 1 : i32
    %2 = arith.select %1, %c1_i32, %c16_i32 : i32
    %3 = vector.broadcast %2 : i32 to vector<1x256xi32>
    %4 = arith.remsi %0, %3 : vector<1x256xi32>
    %c0_i32_0 = arith.constant 0 : i32
    %5 = vector.broadcast %c0_i32_0 : i32 to vector<1x256xi32>
    %6 = arith.cmpi ne, %4, %5 : vector<1x256xi32>
    %c0_i32_1 = arith.constant 0 : i32
    %7 = vector.broadcast %c0_i32_1 : i32 to vector<1x256xi32>
    %8 = arith.cmpi slt, %4, %7 : vector<1x256xi32>
    %c0_i32_2 = arith.constant 0 : i32
    %9 = arith.cmpi slt, %2, %c0_i32_2 : i32
    %10 = vector.broadcast %9 : i1 to vector<1x256xi1>
    %11 = vector.broadcast %10 : vector<1x256xi1> to vector<1x256xi1>
    %12 = arith.xori %8, %11 : vector<1x256xi1>
    %13 = arith.andi %12, %6 : vector<1x256xi1>
    %14 = vector.broadcast %2 : i32 to vector<1x256xi32>
    %15 = arith.addi %4, %14 : vector<1x256xi32>
    %16 = arith.select %13, %15, %4 : vector<1x256xi1>, vector<1x256xi32>
    %c4_i32 = arith.constant 4 : i32
    %17 = vector.broadcast %c4_i32 : i32 to vector<1x256xi32>
    %18 = arith.cmpi sge, %16, %17 : vector<1x256xi32>
    %c1_i32_3 = arith.constant 1 : i32
    %19 = vector.broadcast %c1_i32_3 : i32 to vector<1x256xi32>
    %20 = arith.cmpi sge, %16, %19 : vector<1x256xi32>
    %c12_i32 = arith.constant 12 : i32
    %21 = vector.broadcast %c12_i32 : i32 to vector<1x256xi32>
    %22 = arith.cmpi sge, %16, %21 : vector<1x256xi32>
    %c14_i32 = arith.constant 14 : i32
    %23 = vector.broadcast %c14_i32 : i32 to vector<1x256xi32>
    %24 = arith.cmpi sge, %16, %23 : vector<1x256xi32>
    %c2_i32 = arith.constant 2 : i32
    %25 = vector.broadcast %c2_i32 : i32 to vector<1x256xi32>
    %26 = arith.cmpi sge, %16, %25 : vector<1x256xi32>
    %c0 = arith.constant 0 : index
    %c0_4 = arith.constant 0 : index
    %27 = vector.load %arg2[%c0, %c0_4] : memref<4x4xf32, #tpu.memory_space<vmem>>, vector<4x4xf32>
    %c0_5 = arith.constant 0 : index
    %c0_6 = arith.constant 0 : index
    %28 = vector.load %arg3[%c0_5, %c0_6] : memref<4x1xf32, #tpu.memory_space<vmem>>, vector<4x1xf32>
    %c0_7 = arith.constant 0 : index
    %c0_8 = arith.constant 0 : index
    %29 = vector.load %arg4[%c0_7, %c0_8] : memref<32x4xf32, #tpu.memory_space<vmem>>, vector<32x4xf32>
    %c0_9 = arith.constant 0 : index
    %c0_10 = arith.constant 0 : index
    %30 = vector.load %arg5[%c0_9, %c0_10] : memref<32x4xf32, #tpu.memory_space<vmem>>, vector<32x4xf32>
    %c0_11 = arith.constant 0 : index
    %c0_12 = arith.constant 0 : index
    %31 = vector.load %arg6[%c0_11, %c0_12] : memref<32x1xf32, #tpu.memory_space<vmem>>, vector<32x1xf32>
    %c0_13 = arith.constant 0 : index
    %c0_14 = arith.constant 0 : index
    %32 = vector.load %arg7[%c0_13, %c0_14] : memref<4x32xf32, #tpu.memory_space<vmem>>, vector<4x32xf32>
    %c0_15 = arith.constant 0 : index
    %c0_16 = arith.constant 0 : index
    %33 = vector.load %arg8[%c0_15, %c0_16] : memref<4x1xf32, #tpu.memory_space<vmem>>, vector<4x1xf32>
    %c0_17 = arith.constant 0 : index
    %c0_18 = arith.constant 0 : index
    %c0_19 = arith.constant 0 : index
    %34 = vector.load %arg1[%c0_17, %c0_18, %c0_19] : memref<1x4x256xf32, #tpu.memory_space<vmem>>, vector<1x4x256xf32>
    %35 = vector.shape_cast %34 : vector<1x4x256xf32> to vector<4x256xf32>
    %cst = arith.constant dense<0.000000e+00> : vector<4x256xf32>
    %36 = tpu.matmul %27, %35, %cst {dimension_numbers = #tpu.dot_dimension_numbers<[1], [0], [0], [1], [0, 0, 1, 1], [], []>} : vector<4x4xf32>, vector<4x256xf32>, vector<4x256xf32> -> vector<4x256xf32>
    %37 = vector.broadcast %28 : vector<4x1xf32> to vector<4x256xf32>
    %38 = arith.addf %36, %37 : vector<4x256xf32>
    %cst_20 = arith.constant 0.000000e+00 : f32
    %39 = vector.broadcast %cst_20 : f32 to vector<4x256xf32>
    %cst_21 = arith.constant 0.000000e+00 : f32
    %40 = vector.broadcast %cst_21 : f32 to vector<4x256xf32>
    %c32_i32 = arith.constant 32 : i32
    %41 = tpu.dynamic_rotate %38 by %c32_i32 dim 1 : vector<4x256xf32>, i32 -> vector<4x256xf32>
    %42 = arith.addf %39, %41 : vector<4x256xf32>
    %c36_i32 = arith.constant 36 : i32
    %43 = tpu.dynamic_rotate %38 by %c36_i32 dim 1 : vector<4x256xf32>, i32 -> vector<4x256xf32>
    %c20_i32 = arith.constant 20 : i32
    %44 = tpu.dynamic_rotate %38 by %c20_i32 dim 1 : vector<4x256xf32>, i32 -> vector<4x256xf32>
    %45 = vector.shape_cast %18 : vector<1x256xi1> to vector<1x256xi1>
    %46 = vector.broadcast %45 : vector<1x256xi1> to vector<4x256xi1>
    %47 = arith.select %46, %43, %44 : vector<4x256xi1>, vector<4x256xf32>
    %48 = arith.addf %40, %47 : vector<4x256xf32>
    %c193_i32 = arith.constant 193 : i32
    %49 = tpu.dynamic_rotate %38 by %c193_i32 dim 1 : vector<4x256xf32>, i32 -> vector<4x256xf32>
    %c177_i32 = arith.constant 177 : i32
    %50 = tpu.dynamic_rotate %38 by %c177_i32 dim 1 : vector<4x256xf32>, i32 -> vector<4x256xf32>
    %51 = vector.shape_cast %20 : vector<1x256xi1> to vector<1x256xi1>
    %52 = vector.broadcast %51 : vector<1x256xi1> to vector<4x256xi1>
    %53 = arith.select %52, %49, %50 : vector<4x256xi1>, vector<4x256xf32>
    %54 = arith.addf %42, %53 : vector<4x256xf32>
    %c12_i32_22 = arith.constant 12 : i32
    %55 = tpu.dynamic_rotate %38 by %c12_i32_22 dim 1 : vector<4x256xf32>, i32 -> vector<4x256xf32>
    %c252_i32 = arith.constant 252 : i32
    %56 = tpu.dynamic_rotate %38 by %c252_i32 dim 1 : vector<4x256xf32>, i32 -> vector<4x256xf32>
    %57 = vector.shape_cast %22 : vector<1x256xi1> to vector<1x256xi1>
    %58 = vector.broadcast %57 : vector<1x256xi1> to vector<4x256xi1>
    %59 = arith.select %58, %55, %56 : vector<4x256xi1>, vector<4x256xf32>
    %60 = arith.addf %48, %59 : vector<4x256xf32>
    %c78_i32 = arith.constant 78 : i32
    %61 = tpu.dynamic_rotate %38 by %c78_i32 dim 1 : vector<4x256xf32>, i32 -> vector<4x256xf32>
    %c62_i32 = arith.constant 62 : i32
    %62 = tpu.dynamic_rotate %38 by %c62_i32 dim 1 : vector<4x256xf32>, i32 -> vector<4x256xf32>
    %63 = vector.shape_cast %24 : vector<1x256xi1> to vector<1x256xi1>
    %64 = vector.broadcast %63 : vector<1x256xi1> to vector<4x256xi1>
    %65 = arith.select %64, %61, %62 : vector<4x256xi1>, vector<4x256xf32>
    %66 = arith.addf %54, %65 : vector<4x256xf32>
    %c52_i32 = arith.constant 52 : i32
    %67 = tpu.dynamic_rotate %38 by %c52_i32 dim 1 : vector<4x256xf32>, i32 -> vector<4x256xf32>
    %c36_i32_23 = arith.constant 36 : i32
    %68 = tpu.dynamic_rotate %38 by %c36_i32_23 dim 1 : vector<4x256xf32>, i32 -> vector<4x256xf32>
    %69 = vector.shape_cast %18 : vector<1x256xi1> to vector<1x256xi1>
    %70 = vector.broadcast %69 : vector<1x256xi1> to vector<4x256xi1>
    %71 = arith.select %70, %67, %68 : vector<4x256xi1>, vector<4x256xf32>
    %72 = arith.addf %60, %71 : vector<4x256xf32>
    %c34_i32 = arith.constant 34 : i32
    %73 = tpu.dynamic_rotate %38 by %c34_i32 dim 1 : vector<4x256xf32>, i32 -> vector<4x256xf32>
    %c18_i32 = arith.constant 18 : i32
    %74 = tpu.dynamic_rotate %38 by %c18_i32 dim 1 : vector<4x256xf32>, i32 -> vector<4x256xf32>
    %75 = vector.shape_cast %26 : vector<1x256xi1> to vector<1x256xi1>
    %76 = vector.broadcast %75 : vector<1x256xi1> to vector<4x256xi1>
    %77 = arith.select %76, %73, %74 : vector<4x256xi1>, vector<4x256xf32>
    %78 = arith.addf %66, %77 : vector<4x256xf32>
    %c4_i32_24 = arith.constant 4 : i32
    %79 = tpu.dynamic_rotate %38 by %c4_i32_24 dim 1 : vector<4x256xf32>, i32 -> vector<4x256xf32>
    %c244_i32 = arith.constant 244 : i32
    %80 = tpu.dynamic_rotate %38 by %c244_i32 dim 1 : vector<4x256xf32>, i32 -> vector<4x256xf32>
    %81 = vector.shape_cast %18 : vector<1x256xi1> to vector<1x256xi1>
    %82 = vector.broadcast %81 : vector<1x256xi1> to vector<4x256xi1>
    %83 = arith.select %82, %79, %80 : vector<4x256xi1>, vector<4x256xf32>
    %84 = arith.addf %72, %83 : vector<4x256xf32>
    %85 = arith.addf %78, %84 : vector<4x256xf32>
    %cst_25 = arith.constant 1.250000e-01 : f32
    %86 = vector.broadcast %cst_25 : f32 to vector<4x256xf32>
    %87 = arith.mulf %86, %85 : vector<4x256xf32>
    %cst_26 = arith.constant dense<0.000000e+00> : vector<32x256xf32>
    %88 = tpu.matmul %29, %35, %cst_26 {dimension_numbers = #tpu.dot_dimension_numbers<[1], [0], [0], [1], [0, 0, 1, 1], [], []>} : vector<32x4xf32>, vector<4x256xf32>, vector<32x256xf32> -> vector<32x256xf32>
    %cst_27 = arith.constant dense<0.000000e+00> : vector<32x256xf32>
    %89 = tpu.matmul %30, %87, %cst_27 {dimension_numbers = #tpu.dot_dimension_numbers<[1], [0], [0], [1], [0, 0, 1, 1], [], []>} : vector<32x4xf32>, vector<4x256xf32>, vector<32x256xf32> -> vector<32x256xf32>
    %90 = arith.addf %88, %89 : vector<32x256xf32>
    %91 = vector.broadcast %31 : vector<32x1xf32> to vector<32x256xf32>
    %92 = arith.addf %90, %91 : vector<32x256xf32>
    %cst_28 = arith.constant 0.000000e+00 : f32
    %93 = vector.broadcast %cst_28 : f32 to vector<32x256xf32>
    %94 = arith.maximumf %92, %93 : vector<32x256xf32>
    %cst_29 = arith.constant dense<0.000000e+00> : vector<4x256xf32>
    %95 = tpu.matmul %32, %94, %cst_29 {dimension_numbers = #tpu.dot_dimension_numbers<[1], [0], [0], [1], [0, 0, 1, 1], [], []>} : vector<4x32xf32>, vector<32x256xf32>, vector<4x256xf32> -> vector<4x256xf32>
    %96 = vector.broadcast %33 : vector<4x1xf32> to vector<4x256xf32>
    %97 = arith.addf %95, %96 : vector<4x256xf32>
    %98 = arith.negf %97 : vector<4x256xf32>
    %99 = math.exp %98 : vector<4x256xf32>
    %cst_30 = arith.constant 1.000000e+00 : f32
    %100 = vector.broadcast %cst_30 : f32 to vector<4x256xf32>
    %101 = arith.addf %100, %99 : vector<4x256xf32>
    %102 = arith.divf %100, %101 : vector<4x256xf32>
    %103 = arith.mulf %87, %102 : vector<4x256xf32>
    %c0_31 = arith.constant 0 : index
    %c0_32 = arith.constant 0 : index
    %c0_33 = arith.constant 0 : index
    %104 = vector.load %arg9[%c0_31, %c0_32, %c0_33] : memref<1x4x256xf32, #tpu.memory_space<vmem>>, vector<1x4x256xf32>
    %105 = vector.shape_cast %104 : vector<1x4x256xf32> to vector<4x256xf32>
    %106 = vector.shape_cast %103 : vector<4x256xf32> to vector<1x4x256xf32>
    tpu.vector_store %arg9[%c0_31, %c0_32, %c0_33], %106 {strides = array<i32>} : memref<1x4x256xf32, #tpu.memory_space<vmem>>, vector<1x4x256xf32>,
    return
  }
  func.func @transform_0(%arg0: i32) -> (i32, i32, i32) {
    %c0_i32 = arith.constant 0 : i32
    %c0_i32_0 = arith.constant 0 : i32
    %c0_i32_1 = arith.constant 0 : i32
    return %arg0, %c0_i32, %c0_i32_0 : i32, i32, i32
  }
  func.func @transform_1(%arg0: i32) -> (i32, i32) {
    %c0_i32 = arith.constant 0 : i32
    %c0_i32_0 = arith.constant 0 : i32
    %c0_i32_1 = arith.constant 0 : i32
    return %c0_i32, %c0_i32_0 : i32, i32
  }
  func.func @transform_2(%arg0: i32) -> (i32, i32) {
    %c0_i32 = arith.constant 0 : i32
    %c0_i32_0 = arith.constant 0 : i32
    %c0_i32_1 = arith.constant 0 : i32
    return %c0_i32, %c0_i32_0 : i32, i32
  }
  func.func @transform_3(%arg0: i32) -> (i32, i32) {
    %c0_i32 = arith.constant 0 : i32
    %c0_i32_0 = arith.constant 0 : i32
    %c0_i32_1 = arith.constant 0 : i32
    return %c0_i32, %c0_i32_0 : i32, i32
  }
  func.func @transform_4(%arg0: i32) -> (i32, i32) {
    %c0_i32 = arith.constant 0 : i32
    %c0_i32_0 = arith.constant 0 : i32
    %c0_i32_1 = arith.constant 0 : i32
    return %c0_i32, %c0_i32_0 : i32, i32
  }
  func.func @transform_5(%arg0: i32) -> (i32, i32) {
    %c0_i32 = arith.constant 0 : i32
    %c0_i32_0 = arith.constant 0 : i32
    %c0_i32_1 = arith.constant 0 : i32
    return %c0_i32, %c0_i32_0 : i32, i32
  }
  func.func @transform_6(%arg0: i32) -> (i32, i32) {
    %c0_i32 = arith.constant 0 : i32
    %c0_i32_0 = arith.constant 0 : i32
    %c0_i32_1 = arith.constant 0 : i32
    return %c0_i32, %c0_i32_0 : i32, i32
  }
  func.func @transform_7(%arg0: i32) -> (i32, i32) {
    %c0_i32 = arith.constant 0 : i32
    %c0_i32_0 = arith.constant 0 : i32
    %c0_i32_1 = arith.constant 0 : i32
    return %c0_i32, %c0_i32_0 : i32, i32
  }
  func.func @transform_8(%arg0: i32) -> (i32, i32, i32) {
    %c0_i32 = arith.constant 0 : i32
    %c0_i32_0 = arith.constant 0 : i32
    %c0_i32_1 = arith.constant 0 : i32
    return %arg0, %c0_i32, %c0_i32_0 : i32, i32, i32
  }
}

</mosaic_0001>

<bundles_post_ra>
// kernel: tpu_custom_call.1
= control target key start
LH: loop header
LB: loop body
LE: loop exit
PB: predicated region body
PF: predicated region fallthrough
CT: control target
= control target key end

     0   :  { %13 = vsyncpa [#allocation3], 0  ;;  %s1480_s0 = inlined_call_operand.vmem [shape: f32[2,4,256], index: 0, kind: input, shape index: {}]   ;;  %s1481_s1 = inlined_call_operand.vmem [shape: f32[4,4], index: 1, kind: input, shape index: {}]   ;;  %s1482_s2 = inlined_call_operand.vmem [shape: f32[4,1], index: 2, kind: input, shape index: {}]   ;;  %s1483_s3 = inlined_call_operand.vmem [shape: f32[32,4], index: 3, kind: input, shape index: {}]   ;;  %s1484_s4 = inlined_call_operand.vmem [shape: f32[32,4], index: 4, kind: input, shape index: {}]   ;;  %s1485_s5 = inlined_call_operand.vmem [shape: f32[32,1], index: 5, kind: input, shape index: {}]   ;;  %s1486_s6 = inlined_call_operand.vmem [shape: f32[4,32], index: 6, kind: input, shape index: {}]   ;;  %s1487_s7 = inlined_call_operand.vmem [shape: f32[4,1], index: 7, kind: input, shape index: {}]   ;;  %s1488_s8 = inlined_call_operand.hbm [shape: f32[2,4,256], index: 8, kind: output, shape index: {}]  }
   0x1   :  { %15 = vsyncpa [#allocation3 + $0x1], 0  ;;  %s1159_s27 = smov 0   ;;  %s1161_s28 = smov 0  }
   0x2   :  { %s1163_s29 = smov 0   ;;  %s1165_s30 = smov 0  }
   0x3 LB: > { %s1180_s9 = sadd.s32 4294967295, %s1097_s30   ;;  %s928_s10 = sadd.s32 4294967294, %s1097_s30   ;;  %s1097_s30 = sphi %s1165_s30, %s1499_s30   ;;  %s1093_s29 = sphi %s1163_s29, %s1498_s29   ;;  %s1089_s28 = sphi %s1161_s28, %s1497_s28   ;;  %s1085_s27 = sphi %s1159_s27, %s1496_s27  }
   0x4   : > { %s1184_s11 = sadd.s32 1, %s1097_s30   ;;  %s201_s12 = sadd.s32 1, %s1093_s29 }
   0x5   : > { %s198_s13 = ssub.s32 %s1097_s30, %s1184_s11  ;;  %p211_p0 = scmp.ne.s32.totalorder %s1093_s29, %s1089_s28 }
   0x6   : > { %p199_p1 = scmp.eq.s32.totalorder %s198_s13, 0  ;;  %p212_p2 = scmp.eq.s32.totalorder %s1180_s9, 1 }
   0x7   : > { %p217_p3 = scmp.ne.s32.totalorder %s1089_s28, %s1085_s27  ;;  %p218_p4 = scmp.eq.s32.totalorder %s928_s10, 1 }
   0x8   : > { %s1195_s14 = scalar_select %p199_p1, %s1093_s29, %s201_s12  }
   0x9   : > { %p1197_p5 = por %p212_p2, %p211_p0  ;;  %p1201_p6 = por %p218_p4, %p217_p3 }
   0xa   : > { %p931_p7 = scmp.ge.s32.totalorder %s1097_s30, 1  ;;  %p265_p8 = scmp.lt.s32.totalorder %s1097_s30, 3 }
   0xc   : > { %p266_p9 = pnand %p931_p7, %p265_p8 }
   0xd   : > { %p299_p10 = scmp.lt.s32.totalorder (!%p266_p9), %s1180_s9, 1  ;;  %s1100_s26 = smov (!%p266_p9), 20  }
   0xe   : > { %269 = sbr.rel (%p266_p9) target bundleno = 697 (0x2b9), region = 52  ;;  %s1101_s10 = smov (!%p266_p9), 36  }
   0xf   : > { %s1102_s12 = smov (!%p266_p9), 65   ;;  %s1103_s13 = smov (!%p266_p9), 49  }
  0x10   : > { %s1104_s17 = smov (!%p266_p9), 12   ;;  %s1105_s18 = smov (!%p266_p9), 124  }
  0x11   : > { %s1108_s21 = smov (!%p266_p9), 62   ;;  %s1109_s22 = smov (!%p266_p9), 52  }
  0x12   : > { %s1111_s24 = smov (!%p266_p9), 18   ;;  %s1112_s25 = smov (!%p266_p9), 4  }
  0x13   : > { %v1099_v0 = vmov 0   ;;  %v342_v1 = vld [vmem:[%s1482_s2] sm:$0xf]  ;;  %s300_s19 = scalar_select %p299_p10, %s1180_s9, 1  ;;  %vm1489_vm0 = vcmask 1043456   ;;  %vm367_vm1 = vcmask 31744   ;;  %v304_v30 = vlaneseq }
  0x14   : > { %1024 = vset.pattern.permute.xlu0 %v1099_v0  ;;  %1026 = vset.pattern.permute.xlu1 %v1099_v0  ;;  %v341_v3 = vld [vmem:[%s1481_s1] sm:$0xf]  ;;  %v353_v11 = vld [vmem:[%s1485_s5 + $0x10] sm:$0xff]  ;;  %v344_v44 = vld [vmem:[%s1483_s3 + $0x8] sm:$0xff] }
  0x15   : > { %360 = vperm.xlu0 %1024, %v342_v1   ;;  %1025 = vset.pattern.permute.xlu2 %v1099_v0  ;;  %s968_s20 = sshll.u32 %s300_s19, 3  ;;  %s1106_s19 = smov 32   ;;  %v356_v12 = vld [vmem:[%s1487_s7] sm:$0xf]  ;;  %v1244_v32 = vand.u32 127, %v304_v30 }
  0x16   : > { %s303_s23 = scalar_lea.vmem %s1480_s0, %s968_s20  ;;  %s1107_s20 = smov 78   ;;  %v343_v38 = vld [vmem:[%s1483_s3] sm:$0xff] }
  0x17   : > { %v357_v2 = vld [vmem:[%s303_s23] sm:$0xff]  ;;  %s1110_s23 = smov 34   ;;  %v306_v33 = vadd.s32 128, %v1244_v32  ;;  %v1255_v39 = vand.u32 15, %v1244_v32  ;;  %vm429_vm2 = vcmp.lt.s32.totalorder %v1244_v32, 36  ;;  %vm436_vm3 = vcmp.lt.s32.totalorder %v1244_v32, 20 }
  0x18   : > { %364 = vst [vmem:[#allocation1] ss:$2 sm:$0xff] %v357_v2  ;;  %vm451_vm6 = vcmp.lt.s32.totalorder %v1244_v32, 65  ;;  %vm458_vm7 = vcmp.lt.s32.totalorder %v1244_v32, 49  ;;  %vm473_vm8 = vcmp.lt.s32.totalorder %v1244_v32, 12  ;;  %vm480_vm13 = vcmp.lt.s32.totalorder %v1244_v32, 124 }
  0x19   : > { %v1257_v40 = vand.u32 15, %v306_v33  ;;  %vm331_vm4 = vcmp.ge.s32.totalorder %v1255_v39, 4  ;;  %vm335_vm9 = vcmp.ge.s32.totalorder %v1255_v39, 12  ;;  %vm333_vm10 = vcmp.ge.s32.totalorder %v1255_v39, 1 }
  0x1a   : > { %vm420_vm14 = vcmp.lt.s32.totalorder %v1244_v32, 32  ;;  %vm495_vm15 = vcmp.lt.s32.totalorder %v1244_v32, 78 }
  0x1b   : > { %vm332_vm5 = vcmp.ge.s32.totalorder %v1257_v40, 4  ;;  %vm334_vm11 = vcmp.ge.s32.totalorder %v1257_v40, 1  ;;  %vm338_vm12 = vcmp.ge.s32.totalorder %v1257_v40, 14 }
  0x1f   : > { %v365_v4 = vld.sshfl [vmem:[#allocation1] sm:$0xff pattern:$0x75316420]  ;;  %v366_v5 = vld.sshfl [vmem:[#allocation1 + $0x8] sm:$0xff pattern:$0x75316420] }
  0x20   : > { %935 = vmatpush.msk.msra.mxu0 %vm1489_vm0, %v365_v4  ;;  %937 = vmatpush.msk.msra.mxu1 %vm1489_vm0, %v366_v5  ;;  %644 = vst [vmem:[#allocation1] ss:$2 sm:$0xff] %v357_v2 }
  0x21   : > { %936 = vmatmul.msk.f32.vlgmr.msra.gmra.mxu0 %vm367_vm1, %v341_v3  ;;  %938 = vmatmul.msk.f32.vlgmr.msra.gmra.mxu1 %vm367_vm1, %v341_v3 }
  0x27   : > { %v645_v35 = vld.sshfl [vmem:[#allocation1] sm:$0xff pattern:$0x75316420]  ;;  %v646_v36 = vld.sshfl [vmem:[#allocation1 + $0x8] sm:$0xff pattern:$0x75316420] }
  0x28   : > { %949 = vmatpush.msk.msrb.mxu0 %vm1489_vm0, %v645_v35  ;;  %954 = vmatpush.msk.msrb.mxu1 %vm1489_vm0, %v646_v36  ;;  %vm337_vm0 = vcmp.ge.s32.totalorder %v1255_v39, 14 }
  0x29   : > { %950 = vmatmul.msk.f32.vlgmr.msrb.gmra.mxu0 %vm367_vm1, %v343_v38  ;;  %955 = vmatmul.msk.f32.vlgmr.msrb.gmra.mxu1 %vm367_vm1, %v343_v38 }
  0x31   : > { %951 = vmatmul.msk.f32.gmra.mxu0 %vm367_vm1, %v344_v44  ;;  %956 = vmatmul.msk.f32.gmra.mxu1 %vm367_vm1, %v344_v44 }
  0x87   : > { %v361_v6 = vpop.permute.xlu0 %360 }
  0x9e   : > { %v393_v7 = vpop.f32.mrf.mxu0  ;;  %v413_v8 = vpop.f32.mrf.mxu1 }
  0x9f   : > { %v394_v9 = vadd.f32 %v393_v7, %v361_v6  ;;  %v414_v10 = vadd.f32 %v413_v8, %v361_v6  ;;  %v345_v7 = vld [vmem:[%s1483_s3 + $0x10] sm:$0xff] }
  0xa0   : > { %952 = vmatmul.msk.f32.gmra.mxu0 %vm367_vm1, %v345_v7  ;;  %957 = vmatmul.msk.f32.gmra.mxu1 %vm367_vm1, %v345_v7 }
  0xa1   : > { %434 = vrot.lane.b32.xlu2 %v414_v10, %s1100_s26  ;;  %427 = vrot.lane.b32.xlu1 %v414_v10, %s1101_s10 }
  0xa2   : > { %425 = vrot.lane.b32.xlu0 %v394_v9, %s1101_s10 }
  0xa9   : > { %447 = vrot.lane.b32.xlu2 %v394_v9, %s1102_s12  ;;  %432 = vrot.lane.b32.xlu1 %v394_v9, %s1100_s26  ;;  %s1113_s26 = smov 116  }
  0xaa   : > { %449 = vrot.lane.b32.xlu0 %v414_v10, %s1102_s12 }
  0xb1   : > { %456 = vrot.lane.b32.xlu2 %v414_v10, %s1103_s13  ;;  %454 = vrot.lane.b32.xlu1 %v394_v9, %s1103_s13  ;;  %s296_s13 = sand.u32 1, %s1089_s28  }
  0xb2   : > { %469 = vrot.lane.b32.xlu0 %v394_v9, %s1104_s17 }
  0xb9   : > { %476 = vrot.lane.b32.xlu2 %v394_v9, %s1105_s18  ;;  %471 = vrot.lane.b32.xlu1 %v414_v10, %s1104_s17  ;;  %s1441_s17 = sshll.u32 %s296_s13, 3 }
  0xba   : > { %478 = vrot.lane.b32.xlu0 %v414_v10, %s1105_s18  ;;  %s969_s18 = sshll.u32 %s1180_s9, 3  ;;  %s298_s9 = scalar_lea.vmem [#allocation2], %s1441_s17 }
  0xbb   : > { %s1055_s17 = scalar_lea.hbm %s1488_s8, 16 }
  0xc1   : > { %418 = vrot.lane.b32.xlu2 %v414_v10, %s1106_s19  ;;  %416 = vrot.lane.b32.xlu1 %v394_v9, %s1106_s19 }
  0xc2   : > { %491 = vrot.lane.b32.xlu0 %v394_v9, %s1107_s20 }
  0xc9   : > { %498 = vrot.lane.b32.xlu2 %v394_v9, %s1108_s21  ;;  %493 = vrot.lane.b32.xlu1 %v414_v10, %s1107_s20 }
  0xca   : > { %500 = vrot.lane.b32.xlu0 %v414_v10, %s1108_s21  ;;  %s864_s21 = scalar_lea.hbm %s1488_s8, %s969_s18 }
  0xd1   : > { %515 = vrot.lane.b32.xlu2 %v414_v10, %s1109_s22  ;;  %513 = vrot.lane.b32.xlu1 %v394_v9, %s1109_s22  ;;  %s866_s22 = sshll.u32 %s298_s9, 4  ;;  %s867_s22 = int_to_ptr.vmem [resolvable:$true] %s866_s22 }
  0xd2   : > { %524 = vrot.lane.b32.xlu0 %v394_v9, %s1110_s23 }
  0xd9   : > { %531 = vrot.lane.b32.xlu2 %v394_v9, %s1111_s24  ;;  %526 = vrot.lane.b32.xlu1 %v414_v10, %s1110_s23  ;;  %s868_s23 = sshll.u32 %s864_s21, 4  ;;  %s869_s23 = int_to_ptr.hbm [resolvable:$true] %s868_s23 }
  0xda   : > { %533 = vrot.lane.b32.xlu0 %v414_v10, %s1111_s24  ;;  %s853_s24 = scalar_lea.sflag [#allocation3], %s296_s13 }
  0xe1   : > { %548 = vrot.lane.b32.xlu2 %v414_v10, %s1112_s25  ;;  %546 = vrot.lane.b32.xlu1 %v394_v9, %s1112_s25  ;;  %s1049_s25 = sshra.s32 %s869_s23, 4  ;;  %s1050_s25 = int_to_ptr.hbm [resolvable:$true] %s1049_s25 }
  0xe2   : > { %553 = vrot.lane.b32.xlu0 %v394_v9, %s1113_s26  ;;  %p1056_p0 = scmp.lt.s32.totalorder %s1050_s25, %s1488_s8 }
  0xe9   : > { %555 = vrot.lane.b32.xlu1 %v414_v10, %s1113_s26  ;;  %s1051_s26 = scalar_lea.hbm %s1050_s25, 8 }
  0xea   : > { %733 = vperm.xlu0 %1024, %v353_v11   ;;  %p1052_p11 = scmp.ne.s32.totalorder %s1050_s25, %s1051_s26  ;;  %p1057_p1 = scmp.lt.s32.totalorder %s1055_s17, %s1051_s26 }
  0xec   : > { %p1053_p12 = pnand %p1052_p11, %p1197_p5  ;;  %p1058_p2 = por %p1057_p1, %p1056_p0 }
  0xee   : > { %p1054_p13 = pneg %p1053_p12 }
  0xf0   : > { %p1059_p3 = pnand %p1058_p2, %p1054_p13 }
  0xf2   : > { %759 = vperm.xlu0 %1024, %v356_v12  }
  0xfb   : > { %v435_v13 = vpop.permute.xlu2 %434 }
 0x103   : > { %v448_v15 = vpop.permute.xlu2 %447 }
 0x10b   : > { %v457_v19 = vpop.permute.xlu2 %456 }
 0x113   : > { %v428_v14 = vpop.permute.xlu1 %427  ;;  %v1230_v22 = vpop.permute.xlu2 %476 }
 0x114   : > { %v426_v16 = vpop.permute.xlu0 %425 }
 0x115   : > { %v430_v45 = vsel %vm429_vm2, %v426_v16, %v428_v14  ;;  %v431_v49 = vsel %vm429_vm2, %v428_v14, %v426_v16  ;;  %vm502_vm2 = vcmp.lt.s32.totalorder %v1244_v32, 62 }
 0x11b   : > { %v433_v17 = vpop.permute.xlu1 %432  ;;  %v1234_v25 = vpop.permute.xlu2 %418 }
 0x11c   : > { %v450_v18 = vpop.permute.xlu0 %449  ;;  %v438_v43 = vsel %vm436_vm3, %v435_v13, %v433_v17  ;;  %v437_v46 = vsel %vm436_vm3, %v433_v17, %v435_v13  ;;  %vm517_vm3 = vcmp.lt.s32.totalorder %v1244_v32, 52 }
 0x11d   : > { %v443_v50 = vsel %vm331_vm4, %v431_v49, %v438_v43  ;;  %v452_v51 = vsel %vm451_vm6, %v448_v15, %v450_v18  ;;  %v453_v52 = vsel %vm451_vm6, %v450_v18, %v448_v15  ;;  %v444_v54 = vsel %vm332_vm5, %v430_v45, %v437_v46 }
 0x11e   : > { %vm528_vm6 = vcmp.lt.s32.totalorder %v1244_v32, 34 }
 0x123   : > { %v455_v20 = vpop.permute.xlu1 %454  ;;  %v1242_v29 = vpop.permute.xlu2 %498 }
 0x124   : > { %v1228_v21 = vpop.permute.xlu0 %469  ;;  %v459_v47 = vsel %vm458_vm7, %v455_v20, %v457_v19  ;;  %v460_v48 = vsel %vm458_vm7, %v457_v19, %v455_v20  ;;  %vm339_vm7 = vcmp.ge.s32.totalorder %v1255_v39, 2 }
 0x125   : > { %v465_v55 = vsel %vm333_vm10, %v452_v51, %v459_v47  ;;  %v466_v56 = vsel %vm334_vm11, %v453_v52, %v460_v48  ;;  %vm340_vm10 = vcmp.ge.s32.totalorder %v1257_v40, 2  ;;  %vm1492_vm11 = vcmp.ge.s32.totalorder %v1257_v40, 12  ;;  %v347_v48 = vld [vmem:[%s1484_s4] sm:$0xff]  ;;  %v349_v51 = vld [vmem:[%s1484_s4 + $0x10] sm:$0xff]  ;;  %v350_v52 = vld [vmem:[%s1484_s4 + $0x18] sm:$0xff] }
 0x12b   : > { %v472_v23 = vpop.permute.xlu1 %471  ;;  %v516_v37 = vpop.permute.xlu2 %515 }
 0x12c   : > { %v1232_v24 = vpop.permute.xlu0 %478  ;;  %v474_v58 = vsel %vm473_vm8, %v1228_v21, %v472_v23  ;;  %v475_v59 = vsel %vm473_vm8, %v472_v23, %v1228_v21  ;;  %vm535_vm8 = vcmp.lt.s32.totalorder %v1244_v32, 18 }
 0x12d   : > { %v481_v60 = vsel %vm480_vm13, %v1230_v22, %v1232_v24  ;;  %v482_v61 = vsel %vm480_vm13, %v1232_v24, %v1230_v22 }
 0x12e   : > { %v487_v4 = vsel %vm335_vm9, %v475_v59, %v481_v60  ;;  %v488_v8 = vsel %vm1492_vm11, %v474_v58, %v482_v61  ;;  %vm550_vm9 = vcmp.lt.s32.totalorder %v1244_v32, 4 }
 0x12f   : > { %v489_v19 = vadd.f32 %v487_v4, %v443_v50  ;;  %v490_v20 = vadd.f32 %v488_v8, %v444_v54  ;;  %v348_v50 = vld [vmem:[%s1484_s4 + $0x8] sm:$0xff]  ;;  %v709_v54 = vpop.f32.mrf.mxu1 }
 0x133   : > { %v1236_v26 = vpop.permute.xlu1 %416  ;;  %v532_v53 = vpop.permute.xlu2 %531 }
 0x134   : > { %v1238_v27 = vpop.permute.xlu0 %491  ;;  %v422_v62 = vsel %vm420_vm14, %v1234_v25, %v1236_v26  ;;  %v421_v9 = vsel %vm420_vm14, %v1236_v26, %v1234_v25 }
 0x135   : > { %v467_v10 = vadd.f32 %v465_v55, %v422_v62  ;;  %v468_v21 = vadd.f32 %v466_v56, %v421_v9 }
 0x137   : > { %v712_v58 = vpop.f32.mrf.mxu1 }
 0x13b   : > { %v1240_v28 = vpop.permute.xlu1 %493  ;;  %v549_v22 = vpop.permute.xlu2 %548 }
 0x13c   : > { %v501_v31 = vpop.permute.xlu0 %500  ;;  %v497_v63 = vsel %vm495_vm15, %v1240_v28, %v1238_v27  ;;  %v496_v2 = vsel %vm495_vm15, %v1238_v27, %v1240_v28 }
 0x13d   : > { %v504_v0 = vsel %vm502_vm2, %v501_v31, %v1242_v29  ;;  %v503_v3 = vsel %vm502_vm2, %v1242_v29, %v501_v31 }
 0x13e   : > { %v509_v11 = vsel %vm337_vm0, %v497_v63, %v504_v0  ;;  %v510_v12 = vsel %vm338_vm12, %v496_v2, %v503_v3  ;;  %vm557_vm0 = vcmp.lt.s32.totalorder %v1244_v32, 116  ;;  %v354_v32 = vld [vmem:[%s1485_s5 + $0x18] sm:$0xff] }
 0x13f   : > { %v511_v23 = vadd.f32 %v509_v11, %v467_v10  ;;  %v512_v25 = vadd.f32 %v510_v12, %v468_v21  ;;  %738 = vperm.xlu2 %1025, %v354_v32   ;;  %v715_v62 = vpop.f32.mrf.mxu1 }
 0x143   : > { %v1247_v34 = vpop.permute.xlu1 %513 }
 0x144   : > { %v1259_v41 = vpop.permute.xlu0 %524  ;;  %v518_v5 = vsel %vm517_vm3, %v1247_v34, %v516_v37  ;;  %v519_v6 = vsel %vm517_vm3, %v516_v37, %v1247_v34 }
 0x145   : > { %v520_v15 = vsel %vm331_vm4, %v519_v6, %v431_v49  ;;  %v521_v16 = vsel %vm332_vm5, %v518_v5, %v430_v45  ;;  %v351_v49 = vld [vmem:[%s1485_s5] sm:$0xff] }
 0x146   : > { %v522_v26 = vadd.f32 %v520_v15, %v489_v19  ;;  %v523_v27 = vadd.f32 %v521_v16, %v490_v20 }
 0x147   : > { %723 = vperm.xlu2 %1025, %v351_v49  }
 0x14b   : > { %v527_v42 = vpop.permute.xlu1 %526 }
 0x14c   : > { %v534_v57 = vpop.permute.xlu0 %533  ;;  %v530_v13 = vsel %vm528_vm6, %v527_v42, %v1259_v41  ;;  %v529_v17 = vsel %vm528_vm6, %v1259_v41, %v527_v42  ;;  %v352_v41 = vld [vmem:[%s1485_s5 + $0x8] sm:$0xff]  ;;  %v346_v42 = vld [vmem:[%s1483_s3 + $0x18] sm:$0xff] }
 0x14d   : > { %v537_v14 = vsel %vm535_vm8, %v534_v57, %v532_v53  ;;  %v536_v18 = vsel %vm535_vm8, %v532_v53, %v534_v57  ;;  %728 = vperm.xlu1 %1026, %v352_v41   ;;  %953 = vmatmul.msk.f32.gmra.mxu0 %vm367_vm1, %v346_v42  ;;  %v680_v53 = vpop.f32.mrf.mxu0 }
 0x14e   : > { %v542_v24 = vsel %vm339_vm7, %v530_v13, %v537_v14  ;;  %v543_v28 = vsel %vm340_vm10, %v529_v17, %v536_v18  ;;  %958 = vmatmul.msk.f32.gmra.mxu1 %vm367_vm1, %v346_v42 }
 0x14f   : > { %v544_v38 = vadd.f32 %v542_v24, %v511_v23  ;;  %v545_v44 = vadd.f32 %v543_v28, %v512_v25 }
 0x153   : > { %v547_v1 = vpop.permute.xlu1 %546 }
 0x154   : > { %v554_v29 = vpop.permute.xlu0 %553  ;;  %v551_v31 = vsel %vm550_vm9, %v547_v1, %v549_v22  ;;  %v552_v33 = vsel %vm550_vm9, %v549_v22, %v547_v1 }
 0x155   : > { %v683_v57 = vpop.f32.mrf.mxu0 }
 0x15b   : > { %v556_v30 = vpop.permute.xlu1 %555 }
 0x15c   : > { %v558_v34 = vsel %vm557_vm0, %v554_v29, %v556_v30  ;;  %v559_v35 = vsel %vm557_vm0, %v556_v30, %v554_v29  ;;  %v734_v12 = vpop.permute.xlu0 %733 }
 0x15d   : > { %v560_v36 = vsel %vm331_vm4, %v552_v33, %v558_v34  ;;  %v561_v37 = vsel %vm332_vm5, %v551_v31, %v559_v35  ;;  %vm1493_vm4 = vcmask 1043456   ;;  %v686_v61 = vpop.f32.mrf.mxu0  ;;  %v355_v34 = vld [vmem:[%s1486_s6] sm:$0xf] }
 0x15e   : > { %v562_v43 = vadd.f32 %v560_v36, %v522_v26  ;;  %v563_v39 = vadd.f32 %v561_v37, %v523_v27  ;;  %vm1494_vm5 = vmmov %vm1493_vm4 }
 0x15f   : > { %vm1495_vm8 = vmmov %vm1493_vm4 }
 0x160   : > { %v564_v40 = vadd.f32 %v562_v43, %v544_v38  ;;  %v565_v45 = vadd.f32 %v563_v39, %v545_v44 }
 0x162   : > { %v1404_v46 = vmul.f32 0.125, %v564_v40  ;;  %v1406_v47 = vmul.f32 0.125, %v565_v45 }
 0x164   : > { %939 = vmatpush.msk.msra.mxu2 %vm1493_vm4, %v1404_v46  ;;  %944 = vmatpush.msk.msra.mxu3 %vm1494_vm5, %v1406_v47  ;;  %v760_v35 = vpop.permute.xlu0 %759 }
 0x165   : > { %940 = vmatmul.msk.f32.vlgmr.msra.gmra.mxu2 %vm367_vm1, %v347_v48  ;;  %945 = vmatmul.msk.f32.vlgmr.msra.gmra.mxu3 %vm367_vm1, %v347_v48 }
 0x16d   : > { %941 = vmatmul.msk.f32.gmra.mxu2 %vm367_vm1, %v348_v50  ;;  %946 = vmatmul.msk.f32.gmra.mxu3 %vm367_vm1, %v348_v50 }
 0x175   : > { %942 = vmatmul.msk.f32.gmra.mxu2 %vm367_vm1, %v349_v51  ;;  %947 = vmatmul.msk.f32.gmra.mxu3 %vm367_vm1, %v349_v51 }
 0x17d   : > { %943 = vmatmul.msk.f32.gmra.mxu2 %vm367_vm1, %v350_v52  ;;  %948 = vmatmul.msk.f32.gmra.mxu3 %vm367_vm1, %v350_v52  ;;  %vm762_vm1 = vcmask 261120  }
 0x199   : > { %v739_v1 = vpop.permute.xlu2 %738 }
 0x1a1   : > { %v724_v20 = vpop.permute.xlu2 %723 }
 0x1bf   : > { %v729_v15 = vpop.permute.xlu1 %728 }
 0x1ca   : > { %v689_v2 = vpop.f32.mrf.mxu0 }
 0x1cb   : > { %v718_v3 = vpop.f32.mrf.mxu1 }
 0x1e8   : > { %v603_v55 = vpop.f32.mrf.mxu2  ;;  %v632_v56 = vpop.f32.mrf.mxu3 }
 0x1e9   : > { %v681_v13 = vadd.f32 %v680_v53, %v603_v55  ;;  %v710_v14 = vadd.f32 %v709_v54, %v632_v56 }
 0x1eb   : > { %v741_v25 = vadd.f32 %v724_v20, %v681_v13  ;;  %v742_v26 = vadd.f32 %v724_v20, %v710_v14 }
 0x1ed   : > { %v749_v31 = vmax.f32 %v741_v25, 0.0  ;;  %v750_v33 = vmax.f32 %v742_v26, 0.0 }
 0x1f0   : > { %v606_v59 = vpop.f32.mrf.mxu2  ;;  %v635_v60 = vpop.f32.mrf.mxu3 }
 0x1f1   : > { %v684_v8 = vadd.f32 %v683_v57, %v606_v59  ;;  %v713_v9 = vadd.f32 %v712_v58, %v635_v60 }
 0x1f3   : > { %v743_v21 = vadd.f32 %v729_v15, %v684_v8  ;;  %v744_v22 = vadd.f32 %v729_v15, %v713_v9 }
 0x1f5   : > { %v751_v29 = vmax.f32 %v743_v21, 0.0  ;;  %v752_v30 = vmax.f32 %v744_v22, 0.0 }
 0x1f8   : > { %v609_v63 = vpop.f32.mrf.mxu2  ;;  %v638_v0 = vpop.f32.mrf.mxu3 }
 0x1f9   : > { %v687_v4 = vadd.f32 %v686_v61, %v609_v63  ;;  %v716_v5 = vadd.f32 %v715_v62, %v638_v0 }
 0x1fb   : > { %v745_v18 = vadd.f32 %v734_v12, %v687_v4  ;;  %v746_v19 = vadd.f32 %v734_v12, %v716_v5 }
 0x1fd   : > { %v753_v27 = vmax.f32 %v745_v18, 0.0  ;;  %v754_v28 = vmax.f32 %v746_v19, 0.0 }
 0x200   : > { %v612_v6 = vpop.f32.mrf.mxu2  ;;  %v641_v7 = vpop.f32.mrf.mxu3 }
 0x201   : > { %v690_v10 = vadd.f32 %v689_v2, %v612_v6  ;;  %v719_v11 = vadd.f32 %v718_v3, %v641_v7 }
 0x203   : > { %v747_v16 = vadd.f32 %v739_v1, %v690_v10  ;;  %v748_v17 = vadd.f32 %v739_v1, %v719_v11 }
 0x205   : > { %v755_v23 = vmax.f32 %v747_v16, 0.0  ;;  %v756_v24 = vmax.f32 %v748_v17, 0.0 }
 0x207   : > { %778 = vmatpush.msrb.mxu2 %v755_v23  ;;  %798 = vmatpush.msrb.mxu3 %v756_v24 }
 0x209   : > { %779 = vmatpush.msrb.mxu2 %v753_v27  ;;  %799 = vmatpush.msrb.mxu3 %v754_v28 }
 0x20b   : > { %780 = vmatpush.msrb.mxu2 %v751_v29  ;;  %800 = vmatpush.msrb.mxu3 %v752_v30 }
 0x20d   : > { %781 = vmatpush.msrb.mxu2 %v749_v31  ;;  %801 = vmatpush.msrb.mxu3 %v750_v33 }
 0x20e   : > { %959 = vmatmul.msk.f32.vlgmr.msrb.gmra.mxu2 %vm762_vm1, %v355_v34  ;;  %960 = vmatmul.msk.f32.vlgmr.msrb.gmra.mxu3 %vm762_vm1, %v355_v34 }
 0x291   : > { %v783_v36 = vpop.f32.mrf.mxu2  ;;  %v803_v37 = vpop.f32.mrf.mxu3 }
 0x292   : > { %v784_v38 = vadd.f32 %v783_v36, %v760_v35  ;;  %v804_v41 = vadd.f32 %v803_v37, %v760_v35 }
 0x294   : > { %v961_v42 = vmul.f32 -1.442695, %v784_v38  ;;  %v962_v32 = vmul.f32 -1.442695, %v804_v41 }
 0x296   : > { %1027 = vpow2.f32 %v961_v42 }
 0x297   : > { %1029 = vpow2.f32 %v962_v32 }
 0x29c   : > { %v1028_v43 = vpop.eup %1027 }
 0x29d   : > { %v1030_v44 = vpop.eup %1029  ;;  %v812_v39 = vadd.f32 1.0, %v1028_v43 }
 0x29e   : > { %v813_v40 = vadd.f32 1.0, %v1030_v44 }
 0x29f   : > { %1031 = vrcp.f32 %v812_v39  ;;  %v825_v54 = vand.u32 2147483648, %v812_v39  ;;  %v823_v57 = vand.u32 2147483647, %v812_v39  ;;  %vm819_vm14 = vweird.f32 %v812_v39 }
 0x2a0   : > { %1033 = vrcp.f32 %v813_v40  ;;  %v840_v55 = vand.u32 2147483648, %v813_v40  ;;  %v838_v58 = vand.u32 2147483647, %v813_v40  ;;  %vm834_vm15 = vweird.f32 %v813_v40 }
 0x2a1   : > { %v826_v62 = vor.u32 1.1754944e-38, %v825_v54  ;;  %vm824_vm6 = vcmp.eq.f32.partialorder %v823_v57, 8.507059e+37 }
 0x2a2   : > { %v841_v63 = vor.u32 1.1754944e-38, %v840_v55  ;;  %vm839_vm7 = vcmp.eq.f32.partialorder %v838_v58, 8.507059e+37 }
 0x2a5   : > { %v1032_v45 = vpop.eup %1031 }
 0x2a6   : > { %v1034_v48 = vpop.eup %1033  ;;  %v815_v49 = vmul.f32 %v1032_v45, %v812_v39  ;;  %vm820_vm12 = vweird.f32 %v1032_v45 }
 0x2a7   : > { %v830_v50 = vmul.f32 %v1034_v48, %v813_v40  ;;  %vm835_vm13 = vweird.f32 %v1034_v48  ;;  %vm821_vm2 = vmor %vm819_vm14, %vm820_vm12 }
 0x2a8   : > { %v816_v51 = vsub.f32 1.0, %v815_v49  ;;  %vm836_vm3 = vmor %vm834_vm15, %vm835_vm13 }
 0x2a9   : > { %v831_v52 = vsub.f32 1.0, %v830_v50 }
 0x2aa   : > { %v817_v53 = vmul.f32 %v1032_v45, %v816_v51 }
 0x2ab   : > { %v832_v56 = vmul.f32 %v1034_v48, %v831_v52 }
 0x2ac   : > { %v818_v59 = vadd.f32 %v1032_v45, %v817_v53 }
 0x2ad   : > { %v833_v60 = vadd.f32 %v1034_v48, %v832_v56 }
 0x2ae   : > { %v822_v61 = vsel %vm821_vm2, %v1032_v45, %v818_v59 }
 0x2af   : > { %v837_v0 = vsel %vm836_vm3, %v1034_v48, %v833_v60  ;;  %v827_v1 = vsel %vm824_vm6, %v826_v62, %v822_v61 }
 0x2b0   : > { %v842_v2 = vsel %vm839_vm7, %v841_v63, %v837_v0  ;;  %v844_v4 = vmul.f32 %v827_v1, %v1404_v46 }
 0x2b1   : > { %v845_v3 = vmul.f32 %v842_v2, %v1406_v47 }
 0x2b3   : > { %v848_v5 = vrot.slane %v845_v3, 4 }
 0x2b5   : > { %v849_v6 = vsel %vm1495_vm8, %v844_v4, %v848_v5 }
 0x2b6   : > { %851 = vst [vmem:[%s298_s9] sm:$0xff] %v849_v6 }
 0x2b7   : > { %1062 = shalt.err (!%p1059_p3)
}
 0x2b8   : > { %970 = dma.vmem_to_hbm [thread:$0]  (%p1197_p5), %s867_s22, 128, %s869_s23, %s853_s24  }
 0x2b9 PF: > { %p976_p4 = scmp.ge.s32.totalorder %s1097_s30, 2  ;;  %s880_s13 = sand.u32 1, %s1085_s27  }
 0x2ba   : > { %s881_s20 = scalar_lea.sflag [#allocation3], %s880_s13 }
 0x2bb   : > { %p973_p7 = pnand %p976_p4, %p1201_p6 }
 0x2bd   : > { %p974_p8 = pneg %p973_p7 }
 0x2bf   : > { %1080 = dma.done.wait (%p974_p8), %s881_s20, 128  }
 0x2c0   : > { %1082 = vsyncadd (%p974_p8), %s881_s20, 4294967168  ;;  %p18_p9 = scmp.ge.s32.totalorder %s1184_s11, 4   ;;  %s1496_s27 = smov %s1089_s28 }
 0x2c1   : > { %s1497_s28 = smov %s1093_s29  ;;  %s1498_s29 = smov %s1195_s14 }
 0x2c2   : > { %s1499_s30 = smov %s1184_s11  ;;  %20 = sbr.rel (!%p18_p9) target bundleno = 3 (0x3), region = 87 }
 0x2c7   :  { %887 = vsyncpa [#allocation3], 1 }
 0x2c8   :  { %889 = vsyncpa [#allocation3 + $0x1], 1 }

</bundles_post_ra>
